<compile_context>
chip_gen: v5e
topology: v5e:2x2
jax: 0.10.0
libtpu: 0.0.40
codegen_flags: <defaults>
</compile_context>

<pallas_src>
import functools

import jax
import jax.numpy as jnp
from jax import lax
from jax.experimental import pallas as pl
from jax.experimental.pallas import tpu as pltpu


# --------------------------------------------------------------------------- #
# Kernel 1: per-node-tile cross entropy + normalized bf16 node table
# --------------------------------------------------------------------------- #
def _prep_kernel(logits_t_ref, target_ref, mask_ref, deg_ref,
                 norm_t_ref, ce_ref, num_ref, den_ref):
    i = pl.program_id(0)

    @pl.when(i == 0)
    def _init():
        num_ref[...] = jnp.zeros_like(num_ref)
        den_ref[...] = jnp.zeros_like(den_ref)

    lg = logits_t_ref[...]                                   # (C, nt) f32
    tgt = target_ref[...]                                    # (1, nt) i32
    msk = mask_ref[...]                                      # (1, nt) f32
    C, nt = lg.shape

    # masked-mean cross entropy: log-sum-exp over the class (sublane) axis.
    m = jnp.max(lg, axis=0, keepdims=True)                   # (1, nt)
    lse = m + jnp.log(jnp.sum(jnp.exp(lg - m), axis=0, keepdims=True))
    cls = lax.broadcasted_iota(jnp.int32, (C, nt), 0)
    tgt_logit = jnp.sum(jnp.where(cls == tgt, lg, 0.0), axis=0, keepdims=True)
    per_node = lse - tgt_logit                               # (1, nt)
    num_ref[...] += jnp.sum(per_node * msk, axis=1, keepdims=True)
    den_ref[...] += jnp.sum(msk, axis=1, keepdims=True)

    # normalized = logits * rsqrt(deg); deg==0 rows -> 0 so isolated nodes
    # cannot NaN-poison the dense incidence matmul (documented deviation).
    deg = deg_ref[...]                                       # (1, nt)
    inv = jnp.where(deg > 0.0, lax.rsqrt(deg), 0.0)
    norm_t_ref[...] = (lg * inv).astype(jnp.bfloat16)

    @pl.when(i == pl.num_programs(0) - 1)
    def _fin():
        # all-zero-mask guard (documented deviation: 0 instead of NaN)
        ce_ref[...] = num_ref[...] / jnp.maximum(den_ref[...], 1.0)


# --------------------------------------------------------------------------- #
# Kernel 2: per-edge-tile smoothness via signed-incidence matmul,
#           node axis chunked inside, per-tile partial sums out.
# --------------------------------------------------------------------------- #
def _smooth_kernel(norm_t_ref, edges_ref, out_ref, *, node_chunk, n_chunks):
    C = norm_t_ref.shape[0]
    e_tile = edges_ref.shape[1]
    row = edges_ref[0:1, :]                                  # (1, Et) i32
    col = edges_ref[1:2, :]                                  # (1, Et) i32

    # One iota, reused for every node chunk (compare against shifted row/col).
    ids = lax.broadcasted_iota(jnp.int32, (node_chunk, e_tile), 0)

    def body(k, acc):
        base = pl.multiple_of(k * node_chunk, 256)
        r = row - base
        c = col - base
        # Signed incidence: mask difference in int32, single bf16 convert
        # (keeps the mask math off bf16 VALU; one convert per element).
        s = ((ids == r).astype(jnp.int32)
             - (ids == c).astype(jnp.int32)).astype(jnp.bfloat16)   # (Nc, Et)
        lhs = norm_t_ref[:, pl.ds(base, node_chunk)]                # (C, Nc) bf16
        return acc + jnp.dot(lhs, s, preferred_element_type=jnp.float32)

    acc0 = jnp.zeros((C, e_tile), jnp.float32)
    acc = lax.fori_loop(0, n_chunks, body, acc0, unroll=(n_chunks <= 4))

    # diff[c, e] = norm[row[e], c] - norm[col[e], c]; padded edges (row=col=0)
    # produce an all-zero column.  Per-tile partial sum of squares, broadcast
    # across a lane-dense (1, 128) output block so the edge axis can be
    # 'parallel' (v7x: both TensorCores).
    partial = jnp.sum(acc * acc)
    out_ref[...] = jnp.zeros((1, 128), jnp.float32) + partial


# --------------------------------------------------------------------------- #
# Sizing helpers (generation-aware)
# --------------------------------------------------------------------------- #
def _round_up(x, m):
    return ((x + m - 1) // m) * m


def _tpu_vmem_limit_bytes():
    cap = 64 << 20   # conservative fallback (v7x-sized) if the query fails
    try:
        cap = int(pltpu.get_tpu_info().vmem_capacity_bytes)
    except Exception:
        pass
    # ~96 MiB on 128 MiB parts (v5e/v6e), ~48 MiB on 64 MiB parts (v7x).
    return int(min((cap * 3) // 4, 100 << 20))


def _pick_tiles(n_nodes, n_edges, vmem_limit_bytes):
    # Node-chunk (matmul contraction) size: <= 1024, multiple of 256.
    node_chunk = min(1024, _round_up(max(n_nodes, 1), 256))
    # Per-chunk temporaries (i32 iota, compare masks, i32 + bf16 incidence)
    # cost <= ~16 bytes per (node_chunk x e_tile) element; keep them to about
    # a third of the scoped-VMEM limit (rest: resident bf16 node table,
    # double-buffered edge tiles, accumulator, pipeline headroom).
    budget = max(8 << 20, vmem_limit_bytes // 3)
    e_tile = budget // (16 * node_chunk)
    e_tile = max(256, (e_tile // 256) * 256)
    e_tile = min(e_tile, 8192)
    e_tile = min(e_tile, _round_up(max(n_edges, 1), 256))   # don't over-pad tiny graphs
    return int(node_chunk), int(e_tile)


# --------------------------------------------------------------------------- #
# Wrapper
# --------------------------------------------------------------------------- #
def graph_loss(output, target, edge_index, train_mask=None, mu=0.01):
    """output: (N, C) f32 logits; target: (N,) int labels;
       edge_index: (2, E) int; train_mask: (N,) bool or None (None => full CE)."""
    output = jnp.asarray(output, jnp.float32)
    N, C = output.shape
    E = int(edge_index.shape[1])

    row = jnp.asarray(edge_index[0], jnp.int32)
    col = jnp.asarray(edge_index[1], jnp.int32)

    # Static branch mirrors `if data.train_mask:` without a host sync.
    if train_mask is None:
        mask = jnp.ones((N,), jnp.float32)
    else:
        mask = jnp.asarray(train_mask, jnp.float32)

    # Node degrees from `row`: one cheap scatter-add outside the kernel.
    deg = jnp.zeros((N,), jnp.float32).at[row].add(1.0)

    vmem_limit = _tpu_vmem_limit_bytes()
    node_chunk, e_tile = _pick_tiles(N, E, vmem_limit)

    # ---- pad node tables (padded nodes: deg 0 -> norm 0, mask 0 -> no CE) ---
    n_pad = _round_up(N, node_chunk)
    pn = n_pad - N
    logits_t = jnp.pad(output, ((0, pn), (0, 0))).T                     # (C, Np)
    tgt_p = jnp.pad(jnp.asarray(target, jnp.int32), (0, pn)).reshape(1, n_pad)
    mask_p = jnp.pad(mask, (0, pn)).reshape(1, n_pad)
    deg_p = jnp.pad(deg, (0, pn)).reshape(1, n_pad)

    # ---- kernel 1: CE + bf16 normalized node table (tiled over nodes) ------
    n_tile = node_chunk
    norm_t, ce = pl.pallas_call(
        _prep_kernel,
        out_shape=(jax.ShapeDtypeStruct((C, n_pad), jnp.bfloat16),
                   jax.ShapeDtypeStruct((1, 1), jnp.float32)),
        grid_spec=pltpu.PrefetchScalarGridSpec(
            num_scalar_prefetch=0,
            grid=(n_pad // n_tile,),
            in_specs=[
                pl.BlockSpec((C, n_tile), lambda i: (0, i)),   # logits^T tile
                pl.BlockSpec((1, n_tile), lambda i: (0, i)),   # target tile
                pl.BlockSpec((1, n_tile), lambda i: (0, i)),   # mask tile
                pl.BlockSpec((1, n_tile), lambda i: (0, i)),   # degree tile
            ],
            out_specs=(pl.BlockSpec((C, n_tile), lambda i: (0, i)),
                       pl.BlockSpec((1, 1), lambda i: (0, 0))),
            scratch_shapes=[pltpu.VMEM((1, 1), jnp.float32),   # CE numerator
                            pltpu.VMEM((1, 1), jnp.float32)]), # CE denominator
        compiler_params=pltpu.CompilerParams(
            dimension_semantics=("arbitrary",),
            vmem_limit_bytes=vmem_limit),
    )(logits_t, tgt_p, mask_p, deg_p)

    # ---- pack & pad edges (padding edges: row == col == 0 -> zero column) --
    e_pad = _round_up(E, e_tile)
    edges = jnp.pad(jnp.stack([row, col], axis=0), ((0, 0), (0, e_pad - E)))
    num_tiles = e_pad // e_tile

    # ---- kernel 2: smoothness partial sums (tiled over edges, 'parallel') --
    smooth_kernel = functools.partial(_smooth_kernel,
                                      node_chunk=node_chunk,
                                      n_chunks=n_pad // node_chunk)
    partials = pl.pallas_call(
        smooth_kernel,
        out_shape=jax.ShapeDtypeStruct((1, 128 * num_tiles), jnp.float32),
        grid_spec=pltpu.PrefetchScalarGridSpec(
            num_scalar_prefetch=0,
            grid=(num_tiles,),
            in_specs=[
                pl.BlockSpec((C, n_pad), lambda i: (0, 0)),     # resident bf16 table
                pl.BlockSpec((2, e_tile), lambda i: (0, i)),    # packed edge tile
            ],
            out_specs=pl.BlockSpec((1, 128), lambda i: (0, i))),
        compiler_params=pltpu.CompilerParams(
            dimension_semantics=("parallel",),
            vmem_limit_bytes=vmem_limit),
    )(norm_t, edges)

    smooth_sum = jnp.sum(partials.reshape(num_tiles, 128)[:, 0])
    return ce[0, 0] + (mu / float(E * C)) * smooth_sum


# --------------------------------------------------------------------------- #
# Plain-JAX reference for validation
# --------------------------------------------------------------------------- #
def _graph_loss_ref(output, target, edge_index, train_mask, mu=0.01):
    output = jnp.asarray(output, jnp.float32)
    N, C = output.shape
    row, col = edge_index[0], edge_index[1]
    logp = jax.nn.log_softmax(output, axis=-1)
    per_node = -jnp.take_along_axis(logp, target.reshape(-1, 1), axis=1)[:, 0]
    m = train_mask.astype(jnp.float32)
    ce = jnp.sum(per_node * m) / jnp.sum(m)
    deg = jnp.zeros((N,), jnp.float32).at[row].add(1.0)
    norm = output / jnp.sqrt(deg)[:, None]
    diff = norm[row] - norm[col]
    return ce + mu * jnp.mean(diff ** 2)


if __name__ == "__main__":
    key = jax.random.PRNGKey(0)
    N, C = 16, 8                       # nodes, classes
    # Ring graph, both directions -> every node has degree 2 in `row`.
    src = jnp.arange(N, dtype=jnp.int32)
    dst = (src + 1) % N
    edge_index = jnp.stack([jnp.concatenate([src, dst]),
                            jnp.concatenate([dst, src])], axis=0)  # (2, 32)

    k1, k2 = jax.random.split(key)
    output = jax.random.normal(k1, (N, C), dtype=jnp.float32)
    target = jax.random.randint(k2, (N,), 0, C, dtype=jnp.int32)
    train_mask = jnp.arange(N) < (N // 2)                          # first half supervised

    loss = graph_loss(output, target, edge_index, train_mask, mu=0.01)
    loss = jax.block_until_ready(loss)

    ref = _graph_loss_ref(output, target, edge_index, train_mask, mu=0.01)
    assert jnp.allclose(loss, ref, rtol=1e-3, atol=1e-3), (loss, ref)

    print("KERNEL_OK")
</pallas_src>

<mosaic_0001>
module attributes {stable_mosaic.version = 11 : i64} {
  func.func @_prep_kernel(%arg0: i32, %arg1: memref<8x256xf32, #tpu.memory_space<vmem>>, %arg2: memref<1x256xi32, #tpu.memory_space<vmem>>, %arg3: memref<1x256xf32, #tpu.memory_space<vmem>>, %arg4: memref<1x256xf32, #tpu.memory_space<vmem>>, %arg5: memref<8x256xbf16, #tpu.memory_space<vmem>>, %arg6: memref<1x1xf32, #tpu.memory_space<vmem>>, %arg7: memref<1x1xf32, #tpu.memory_space<vmem>>, %arg8: memref<1x1xf32, #tpu.memory_space<vmem>>) attributes {dimension_semantics = [#tpu.dimension_semantics<arbitrary>], iteration_bounds = array<i64: 1>, scalar_prefetch = 0 : i64, scratch_operands = 2 : i64, tpu.core_type = #tpu.core_type<tc>, window_params = [{transform_indices = @transform_0, window_bounds = array<i64: 8, 256>}, {transform_indices = @transform_1, window_bounds = array<i64: 1, 256>}, {transform_indices = @transform_2, window_bounds = array<i64: 1, 256>}, {transform_indices = @transform_3, window_bounds = array<i64: 1, 256>}, {transform_indices = @transform_4, window_bounds = array<i64: 8, 256>}, {pipeline_mode = #tpu.pipeline_mode<synchronous>, transform_indices = @transform_5, window_bounds = array<i64: 1, 1>}]} {
    %c0_i32 = arith.constant 0 : i32
    %0 = arith.cmpi eq, %arg0, %c0_i32 : i32
    %1 = arith.extui %0 : i1 to i32
    %c0_i32_0 = arith.constant 0 : i32
    %2 = arith.cmpi ne, %1, %c0_i32_0 : i32
    scf.if %2 {
      %cst_27 = arith.constant 0.000000e+00 : f32
      %47 = vector.broadcast %cst_27 : f32 to vector<1x1xf32>
      %c0_28 = arith.constant 0 : index
      %c0_29 = arith.constant 0 : index
      %48 = vector.load %arg7[%c0_28, %c0_29] : memref<1x1xf32, #tpu.memory_space<vmem>>, vector<1x1xf32>
      tpu.vector_store %arg7[%c0_28, %c0_29], %47 {strides = array<i32>} : memref<1x1xf32, #tpu.memory_space<vmem>>, vector<1x1xf32>,
      %cst_30 = arith.constant 0.000000e+00 : f32
      %49 = vector.broadcast %cst_30 : f32 to vector<1x1xf32>
      %c0_31 = arith.constant 0 : index
      %c0_32 = arith.constant 0 : index
      %50 = vector.load %arg8[%c0_31, %c0_32] : memref<1x1xf32, #tpu.memory_space<vmem>>, vector<1x1xf32>
      tpu.vector_store %arg8[%c0_31, %c0_32], %49 {strides = array<i32>} : memref<1x1xf32, #tpu.memory_space<vmem>>, vector<1x1xf32>,
    } else {
    }
    %c0 = arith.constant 0 : index
    %c0_1 = arith.constant 0 : index
    %3 = vector.load %arg1[%c0, %c0_1] : memref<8x256xf32, #tpu.memory_space<vmem>>, vector<8x256xf32>
    %c0_2 = arith.constant 0 : index
    %c0_3 = arith.constant 0 : index
    %4 = vector.load %arg2[%c0_2, %c0_3] : memref<1x256xi32, #tpu.memory_space<vmem>>, vector<1x256xi32>
    %c0_4 = arith.constant 0 : index
    %c0_5 = arith.constant 0 : index
    %5 = vector.load %arg3[%c0_4, %c0_5] : memref<1x256xf32, #tpu.memory_space<vmem>>, vector<1x256xf32>
    %cst = arith.constant dense<0xFF800000> : vector<256xf32>
    %6 = vector.multi_reduction <maximumf>, %3, %cst [0] : vector<8x256xf32> to vector<256xf32>
    %7 = vector.shape_cast %6 : vector<256xf32> to vector<1x256xf32>
    %8 = vector.broadcast %7 : vector<1x256xf32> to vector<8x256xf32>
    %9 = arith.subf %3, %8 : vector<8x256xf32>
    %10 = math.exp %9 : vector<8x256xf32>
    %cst_6 = arith.constant dense<0.000000e+00> : vector<256xf32>
    %11 = vector.multi_reduction <add>, %10, %cst_6 [0] : vector<8x256xf32> to vector<256xf32>
    %12 = vector.shape_cast %11 : vector<256xf32> to vector<1x256xf32>
    %13 = math.log %12 : vector<1x256xf32>
    %14 = arith.addf %7, %13 : vector<1x256xf32>
    %15 = tpu.iota {dimensions = array<i32: 0>} : vector<8x256xi32>
    %16 = vector.broadcast %4 : vector<1x256xi32> to vector<8x256xi32>
    %17 = arith.cmpi eq, %15, %16 : vector<8x256xi32>
    %cst_7 = arith.constant 0.000000e+00 : f32
    %18 = vector.broadcast %cst_7 : f32 to vector<8x256xf32>
    %19 = arith.select %17, %3, %18 : vector<8x256xi1>, vector<8x256xf32>
    %cst_8 = arith.constant dense<0.000000e+00> : vector<256xf32>
    %20 = vector.multi_reduction <add>, %19, %cst_8 [0] : vector<8x256xf32> to vector<256xf32>
    %21 = vector.shape_cast %20 : vector<256xf32> to vector<1x256xf32>
    %22 = arith.subf %14, %21 : vector<1x256xf32>
    %c0_9 = arith.constant 0 : index
    %c0_10 = arith.constant 0 : index
    %23 = vector.load %arg7[%c0_9, %c0_10] : memref<1x1xf32, #tpu.memory_space<vmem>>, vector<1x1xf32>
    %24 = arith.mulf %22, %5 : vector<1x256xf32>
    %cst_11 = arith.constant dense<0.000000e+00> : vector<1xf32>
    %25 = vector.multi_reduction <add>, %24, %cst_11 [1] : vector<1x256xf32> to vector<1xf32>
    %26 = vector.shape_cast %25 : vector<1xf32> to vector<1x1xf32>
    %27 = arith.addf %23, %26 : vector<1x1xf32>
    %c0_12 = arith.constant 0 : index
    %c0_13 = arith.constant 0 : index
    %28 = vector.load %arg7[%c0_12, %c0_13] : memref<1x1xf32, #tpu.memory_space<vmem>>, vector<1x1xf32>
    tpu.vector_store %arg7[%c0_12, %c0_13], %27 {strides = array<i32>} : memref<1x1xf32, #tpu.memory_space<vmem>>, vector<1x1xf32>,
    %c0_14 = arith.constant 0 : index
    %c0_15 = arith.constant 0 : index
    %29 = vector.load %arg8[%c0_14, %c0_15] : memref<1x1xf32, #tpu.memory_space<vmem>>, vector<1x1xf32>
    %cst_16 = arith.constant dense<0.000000e+00> : vector<1xf32>
    %30 = vector.multi_reduction <add>, %5, %cst_16 [1] : vector<1x256xf32> to vector<1xf32>
    %31 = vector.shape_cast %30 : vector<1xf32> to vector<1x1xf32>
    %32 = arith.addf %29, %31 : vector<1x1xf32>
    %c0_17 = arith.constant 0 : index
    %c0_18 = arith.constant 0 : index
    %33 = vector.load %arg8[%c0_17, %c0_18] : memref<1x1xf32, #tpu.memory_space<vmem>>, vector<1x1xf32>
    tpu.vector_store %arg8[%c0_17, %c0_18], %32 {strides = array<i32>} : memref<1x1xf32, #tpu.memory_space<vmem>>, vector<1x1xf32>,
    %c0_19 = arith.constant 0 : index
    %c0_20 = arith.constant 0 : index
    %34 = vector.load %arg4[%c0_19, %c0_20] : memref<1x256xf32, #tpu.memory_space<vmem>>, vector<1x256xf32>
    %cst_21 = arith.constant 0.000000e+00 : f32
    %35 = vector.broadcast %cst_21 : f32 to vector<1x256xf32>
    %36 = arith.cmpf ogt, %34, %35 : vector<1x256xf32>
    %37 = math.rsqrt %34 : vector<1x256xf32>
    %cst_22 = arith.constant 0.000000e+00 : f32
    %38 = vector.broadcast %cst_22 : f32 to vector<1x256xf32>
    %39 = arith.select %36, %37, %38 : vector<1x256xi1>, vector<1x256xf32>
    %40 = vector.broadcast %39 : vector<1x256xf32> to vector<8x256xf32>
    %41 = arith.mulf %3, %40 : vector<8x256xf32>
    %42 = arith.truncf %41 : vector<8x256xf32> to vector<8x256xbf16>
    %c0_23 = arith.constant 0 : index
    %c0_24 = arith.constant 0 : index
    %43 = vector.load %arg5[%c0_23, %c0_24] : memref<8x256xbf16, #tpu.memory_space<vmem>>, vector<8x256xbf16>
    tpu.vector_store %arg5[%c0_23, %c0_24], %42 {strides = array<i32>} : memref<8x256xbf16, #tpu.memory_space<vmem>>, vector<8x256xbf16>,
    %c0_i32_25 = arith.constant 0 : i32
    %44 = arith.cmpi eq, %arg0, %c0_i32_25 : i32
    %45 = arith.extui %44 : i1 to i32
    %c0_i32_26 = arith.constant 0 : i32
    %46 = arith.cmpi ne, %45, %c0_i32_26 : i32
    scf.if %46 {
      %c0_27 = arith.constant 0 : index
      %c0_28 = arith.constant 0 : index
      %47 = vector.load %arg7[%c0_27, %c0_28] : memref<1x1xf32, #tpu.memory_space<vmem>>, vector<1x1xf32>
      %c0_29 = arith.constant 0 : index
      %c0_30 = arith.constant 0 : index
      %48 = vector.load %arg8[%c0_29, %c0_30] : memref<1x1xf32, #tpu.memory_space<vmem>>, vector<1x1xf32>
      %cst_31 = arith.constant 1.000000e+00 : f32
      %49 = vector.broadcast %cst_31 : f32 to vector<1x1xf32>
      %50 = arith.maximumf %48, %49 : vector<1x1xf32>
      %51 = arith.divf %47, %50 : vector<1x1xf32>
      %c0_32 = arith.constant 0 : index
      %c0_33 = arith.constant 0 : index
      %52 = vector.load %arg6[%c0_32, %c0_33] : memref<1x1xf32, #tpu.memory_space<vmem>>, vector<1x1xf32>
      tpu.vector_store %arg6[%c0_32, %c0_33], %51 {strides = array<i32>} : memref<1x1xf32, #tpu.memory_space<vmem>>, vector<1x1xf32>,
    } else {
    }
    return
  }
  func.func @transform_0(%arg0: i32) -> (i32, i32) {
    %c0_i32 = arith.constant 0 : i32
    %c0_i32_0 = arith.constant 0 : i32
    return %c0_i32, %arg0 : i32, i32
  }
  func.func @transform_1(%arg0: i32) -> (i32, i32) {
    %c0_i32 = arith.constant 0 : i32
    %c0_i32_0 = arith.constant 0 : i32
    return %c0_i32, %arg0 : i32, i32
  }
  func.func @transform_2(%arg0: i32) -> (i32, i32) {
    %c0_i32 = arith.constant 0 : i32
    %c0_i32_0 = arith.constant 0 : i32
    return %c0_i32, %arg0 : i32, i32
  }
  func.func @transform_3(%arg0: i32) -> (i32, i32) {
    %c0_i32 = arith.constant 0 : i32
    %c0_i32_0 = arith.constant 0 : i32
    return %c0_i32, %arg0 : i32, i32
  }
  func.func @transform_4(%arg0: i32) -> (i32, i32) {
    %c0_i32 = arith.constant 0 : i32
    %c0_i32_0 = arith.constant 0 : i32
    return %c0_i32, %arg0 : i32, i32
  }
  func.func @transform_5(%arg0: i32) -> (i32, i32) {
    %c0_i32 = arith.constant 0 : i32
    %c0_i32_0 = arith.constant 0 : i32
    %c0_i32_1 = arith.constant 0 : i32
    return %c0_i32, %c0_i32_0 : i32, i32
  }
}

</mosaic_0001>

<bundles_post_ra>
// kernel: tpu_custom_call.1
= control target key start
LH: loop header
LB: loop body
LE: loop exit
PB: predicated region body
PF: predicated region fallthrough
CT: control target
= control target key end

     0   :  { %11 = vsyncpa [#allocation5], 0  ;;  %s469_s0 = inlined_call_operand.hbm [shape: f32[8,256], index: 0, kind: input, shape index: {}]   ;;  %s470_s1 = inlined_call_operand.hbm [shape: s32[1,256], index: 1, kind: input, shape index: {}]   ;;  %s471_s2 = inlined_call_operand.hbm [shape: f32[1,256], index: 2, kind: input, shape index: {}]   ;;  %s472_s3 = inlined_call_operand.vmem [shape: f32[1,256], index: 3, kind: input, shape index: {}]   ;;  %s473_s4 = inlined_call_operand.hbm [shape: bf16[8,256], index: 4, kind: output, shape index: {0}]   ;;  %s474_s5 = inlined_call_operand.hbm [shape: f32[1,1], index: 5, kind: output, shape index: {1}]  }
   0x1   :  { %12 = vsyncpa [#allocation8], 0 }
   0x2   :  { %13 = vsyncpa [#allocation6], 0  ;;  %s31_s20 = sshll.u32 %s470_s1, 4  ;;  %s32_s20 = int_to_ptr.hbm [resolvable:$true] %s31_s20 }
   0x3   :  { %14 = vsyncpa [#allocation12], 0  ;;  %s380_s21 = smov [#allocation7]   ;;  %s20_s25 = sshll.u32 %s469_s0, 4  ;;  %s21_s25 = int_to_ptr.hbm [resolvable:$true] %s20_s25 }
   0x4   :  { %s33_s22 = sshll.u32 %s380_s21, 4  ;;  %s381_s26 = smov [#allocation4]   ;;  %s34_s22 = int_to_ptr.vmem [resolvable:$true] %s33_s22 }
   0x5   :  { %36 = dma.hbm_to_vmem [thread:$0]  %s32_s20, 32, %s34_s22, [#allocation8]  }
   0x6   :  { %s22_s27 = sshll.u32 %s381_s26, 4  ;;  %s42_s30 = sshll.u32 %s471_s2, 4  ;;  %s23_s27 = int_to_ptr.vmem [resolvable:$true] %s22_s27  ;;  %s43_s30 = int_to_ptr.hbm [resolvable:$true] %s42_s30 }
   0x7   :  { %25 = dma.hbm_to_vmem [thread:$0]  %s21_s25, 256, %s23_s27, [#allocation5]  }
   0x8   :  { %s382_s1 = smov [#allocation9]  }
   0x9   :  { %s44_s6 = sshll.u32 %s382_s1, 4  ;;  %s45_s6 = int_to_ptr.vmem [resolvable:$true] %s44_s6 }
   0xa   :  { %47 = dma.hbm_to_vmem [thread:$0]  %s43_s30, 32, %s45_s6, [#allocation8]  }
   0xb   :  { %372 = dma.done.wait [#allocation5], 256  }
   0xc   :  { %373 = vsyncadd [#allocation5], 4294967040 }
   0xd   :  { %374 = dma.done.wait [#allocation8], 64  }
   0xe   :  { %375 = vsyncadd [#allocation8], 4294967232  ;;  %v425_v0 = vld [vmem:[#allocation9] sm:$0x3]  ;;  %vm139_vm0 = vcmask 1040384   ;;  %v427_v1 = vld [vmem:[#allocation4] sm:$0xff]  ;;  %v109_v18 = vlaneseq }
   0xf   :  { %v429_v2 = vld [vmem:[#allocation4 + $0x8] sm:$0xff]  ;;  %v133_v3 = vperm.slane %v425_v0, 0  ;;  %v134_v4 = vperm.slane %v425_v0, 1  ;;  %v73_v5 = vrot.slane %v427_v1, 4  ;;  %v71_v19 = vld [vmem:[#allocation7] sm:$0x3] }
  0x10   :  { %v79_v6 = vrot.slane %v429_v2, 4  ;;  %v110_v24 = vshrl.u32 %v109_v18, 7  ;;  %v111_v25 = vperm.slane %v71_v19, 0  ;;  %v112_v26 = vperm.slane %v71_v19, 1  ;;  %s384_s7 = smov [#allocation10]   ;;  %s207_s10 = sshll.u32 %s473_s4, 4  ;;  %s208_s10 = int_to_ptr.hbm [resolvable:$true] %s207_s10 }
  0x11   :  { %v149_v7 = vsel %vm139_vm0, %v133_v3, 0.0  ;;  %v150_v8 = vsel %vm139_vm0, %v134_v4, 0.0  ;;  %v74_v9 = vmax.f32 %v427_v1, %v73_v5  ;;  %vm66_vm3 = vcmask 0   ;;  %s205_s8 = sshll.u32 %s384_s7, 4  ;;  %s385_s4 = smov [#allocation11]   ;;  %s206_s8 = int_to_ptr.vmem [resolvable:$true] %s205_s8 }
  0x12   :  { %v80_v10 = vmax.f32 %v429_v2, %v79_v6  ;;  %v151_v11 = vadd.f32 %v150_v8, %v149_v7  ;;  %vm113_vm1 = vcmp.eq.s32.totalorder %v110_v24, %v111_v25  ;;  %vm114_vm2 = vcmp.eq.s32.totalorder %v110_v24, %v112_v26  ;;  %s216_s11 = sshll.u32 %s385_s4, 4  ;;  %s218_s14 = sshll.u32 %s474_s5, 4  ;;  %s217_s11 = int_to_ptr.vmem [resolvable:$true] %s216_s11  ;;  %s219_s14 = int_to_ptr.hbm [resolvable:$true] %s218_s14 }
  0x13   :  { %v75_v12 = vrot.slane %v74_v9, 2  ;;  %v115_v29 = vsel %vm113_vm1, %v427_v1, 0.0  ;;  %v116_v30 = vsel %vm114_vm2, %v429_v2, 0.0  ;;  %v383_v36 = vmov 0.0  }
  0x14   :  { %v81_v13 = vrot.slane %v80_v10, 2  ;;  %152 = vadd.xlane.f32.xlu0 %v151_v11  ;;  %v117_v32 = vrot.slane %v115_v29, 4  ;;  %v123_v35 = vrot.slane %v116_v30, 4  ;;  %68 = vst.msk [vmem:[#allocation3] sm:$0x1] %vm66_vm3, %v383_v36 }
  0x15   :  { %v76_v14 = vmax.f32 %v74_v9, %v75_v12  ;;  %67 = vst.msk [vmem:[#allocation2] sm:$0x1] %vm66_vm3, %v383_v36 }
  0x16   :  { %v82_v15 = vmax.f32 %v80_v10, %v81_v13  ;;  %v118_v40 = vadd.f32 %v117_v32, %v115_v29  ;;  %v124_v42 = vadd.f32 %v123_v35, %v116_v30 }
  0x17   :  { %v77_v16 = vrot.slane %v76_v14, 1 }
  0x18   :  { %v83_v17 = vrot.slane %v82_v15, 1  ;;  %v119_v46 = vrot.slane %v118_v40, 2  ;;  %v125_v48 = vrot.slane %v124_v42, 2 }
  0x19   :  { %v78_v20 = vmax.f32 %v76_v14, %v77_v16 }
  0x1a   :  { %v84_v21 = vmax.f32 %v82_v15, %v83_v17  ;;  %v120_v52 = vadd.f32 %v119_v46, %v118_v40  ;;  %v126_v53 = vadd.f32 %v125_v48, %v124_v42  ;;  %v156_v15 = vld [vmem:[%s472_s3] sm:$0x3] }
  0x1b   :  { %v85_v22 = vsub.f32 %v427_v1, %v78_v20  ;;  %v148_v12 = vld [vmem:[#allocation3] sm:$0x1]  ;;  %vm157_vm4 = vcmp.gt.f32.partialorder %v156_v15, 0.0  ;;  %vm164_vm5 = vweird.f32 %v156_v15 }
  0x1c   :  { %v86_v23 = vsub.f32 %v429_v2, %v84_v21  ;;  %v121_v54 = vrot.slane %v120_v52, 1  ;;  %v127_v55 = vrot.slane %v126_v53, 1 }
  0x1d   :  { %v87_v27 = vmul.f32 1.442695, %v85_v22 }
  0x1e   :  { %v89_v28 = vmul.f32 1.442695, %v86_v23  ;;  %v122_v59 = vadd.f32 %v121_v54, %v120_v52  ;;  %v128_v61 = vadd.f32 %v127_v55, %v126_v53 }
  0x1f   :  { %240 = vpow2.f32 %v87_v27 }
  0x20   :  { %242 = vpow2.f32 %v89_v28 }
  0x25   :  { %v241_v31 = vpop.eup %240 }
  0x26   :  { %v243_v33 = vpop.eup %242  ;;  %v91_v34 = vrot.slane %v241_v31, 4 }
  0x27   :  { %v97_v37 = vrot.slane %v243_v33, 4 }
  0x28   :  { %v92_v38 = vadd.f32 %v241_v31, %v91_v34  ;;  %v131_v31 = vld [vmem:[#allocation2] sm:$0x1] }
  0x29   :  { %v98_v39 = vadd.f32 %v243_v33, %v97_v37 }
  0x2a   :  { %v93_v41 = vrot.slane %v92_v38, 2 }
  0x2b   :  { %v99_v43 = vrot.slane %v98_v39, 2 }
  0x2c   :  { %v94_v44 = vadd.f32 %v93_v41, %v92_v38 }
  0x2d   :  { %v100_v45 = vadd.f32 %v99_v43, %v98_v39 }
  0x2e   :  { %v95_v47 = vrot.slane %v94_v44, 1 }
  0x2f   :  { %v101_v49 = vrot.slane %v100_v45, 1 }
  0x30   :  { %v96_v50 = vadd.f32 %v95_v47, %v94_v44 }
  0x31   :  { %v102_v51 = vadd.f32 %v101_v49, %v100_v45 }
  0x32   :  { %244 = vlog2.f32 %v96_v50 }
  0x33   :  { %246 = vlog2.f32 %v102_v51 }
  0x34   :  { %248 = vrsqrt.f32 %v156_v15 }
  0x38   :  { %v245_v56 = vpop.eup %244 }
  0x39   :  { %v247_v57 = vpop.eup %246  ;;  %v104_v58 = vmul.f32 0.6931472, %v245_v56 }
  0x3a   :  { %v106_v60 = vmul.f32 0.6931472, %v247_v57 }
  0x3b   :  { %v107_v62 = vadd.f32 %v104_v58, %v78_v20 }
  0x3c   :  { %v108_v63 = vadd.f32 %v106_v60, %v84_v21 }
  0x3d   :  { %v129_v5 = vsub.f32 %v107_v62, %v122_v59 }
  0x3e   :  { %v130_v6 = vsub.f32 %v108_v63, %v128_v61 }
  0x3f   :  { %v137_v7 = vmul.f32 %v133_v3, %v129_v5  ;;  %v249_v3 = vpop.eup %248 }
  0x40   :  { %v138_v8 = vmul.f32 %v134_v4, %v130_v6  ;;  %v159_v16 = vmul.f32 %v249_v3, %v156_v15  ;;  %vm165_vm6 = vweird.f32 %v249_v3 }
  0x41   :  { %v140_v9 = vsel %vm139_vm0, %v137_v7, 0.0  ;;  %vm166_vm7 = vmor %vm164_vm5, %vm165_vm6 }
  0x42   :  { %v141_v10 = vsel %vm139_vm0, %v138_v8, 0.0  ;;  %v160_v0 = vmul.f32 %v249_v3, %v159_v16 }
  0x43   :  { %v142_v11 = vadd.f32 %v141_v10, %v140_v9 }
  0x44   :  { %v161_v4 = vmul.f32 0.5, %v160_v0 }
  0x45   :  { %143 = vadd.xlane.f32.xlu0 %v142_v11 }
  0x46   :  { %v162_v17 = vsub.f32 1.5, %v161_v4 }
  0x48   :  { %v163_v18 = vmul.f32 %v249_v3, %v162_v17 }
  0x4a   :  { %v167_v19 = vsel %vm166_vm7, %v249_v3, %v163_v18 }
  0x4b   :  { %v168_v20 = vsel %vm157_vm4, %v167_v19, 0.0 }
  0x4c   :  { %v170_v21 = vperm.slane %v168_v20, 0  ;;  %v171_v22 = vperm.slane %v168_v20, 1 }
  0x4e   :  { %v174_v24 = vmul.f32 %v170_v21, %v427_v1  ;;  %v175_v25 = vmul.f32 %v171_v22, %v429_v2 }
  0x50   :  { %v176_v27 = vpack.c.bf16 %v175_v25, %v174_v24 }
  0x52   :  { %177 = vst [vmem:[#allocation10] sm:$0xff] %v176_v27 }
  0x53   :  { %210 = dma.vmem_to_hbm [thread:$0]  %s206_s8, 128, %s208_s10, [#allocation6]  }
  0x87   :  { %v153_v13 = vpop.xlane.xlu0 %152 }
  0x88   :  { %v154_v14 = vadd.f32 %v153_v13, %v148_v12 }
  0x8a   :  { %155 = vst.msk [vmem:[#allocation3] sm:$0x1] %vm66_vm3, %v154_v14 }
  0x91   :  { %v182_v23 = vld [vmem:[#allocation3] sm:$0x1] }
  0x92   :  { %v183_v26 = vmax.f32 %v182_v23, 1.0 }
  0x94   :  { %250 = vrcp.f32 %v183_v26  ;;  %vm189_vm8 = vweird.f32 %v183_v26  ;;  %v195_v35 = vand.u32 2147483648, %v183_v26  ;;  %v193_v2 = vand.u32 2147483647, %v183_v26 }
  0x96   :  { %v196_v36 = vor.u32 1.1754944e-38, %v195_v35  ;;  %vm194_vm11 = vcmp.eq.f32.partialorder %v193_v2, 8.507059e+37 }
  0x9a   :  { %v251_v28 = vpop.eup %250 }
  0x9b   :  { %v185_v29 = vmul.f32 %v251_v28, %v183_v26  ;;  %vm190_vm9 = vweird.f32 %v251_v28 }
  0x9c   :  { %vm191_vm10 = vmor %vm189_vm8, %vm190_vm9 }
  0x9d   :  { %v186_v30 = vsub.f32 1.0, %v185_v29 }
  0x9f   :  { %v187_v32 = vmul.f32 %v251_v28, %v186_v30 }
  0xa1   :  { %v188_v1 = vadd.f32 %v251_v28, %v187_v32 }
  0xa3   :  { %v192_v37 = vsel %vm191_vm10, %v251_v28, %v188_v1 }
  0xa4   :  { %v197_v39 = vsel %vm194_vm11, %v196_v36, %v192_v37 }
  0xb8   :  { %v144_v33 = vpop.xlane.xlu0 %143 }
  0xb9   :  { %v145_v34 = vadd.f32 %v144_v33, %v131_v31 }
  0xbb   :  { %147 = vst.msk [vmem:[#allocation2] sm:$0x1] %vm66_vm3, %v145_v34 }
  0xc2   :  { %v181_v38 = vld [vmem:[#allocation2] sm:$0x1] }
  0xc3   :  { %v198_v40 = vmul.f32 %v197_v39, %v181_v38 }
  0xc5   :  { %199 = vst.msk [vmem:[#allocation11] sm:$0x1] %vm66_vm3, %v198_v40 }
  0xc6   :  { %221 = dma.vmem_to_hbm [thread:$0]  %s217_s11, 16, %s219_s14, [#allocation12]  }
  0xc7   :  { %376 = dma.done.wait [#allocation6], 128  }
  0xc8   :  { %377 = vsyncadd [#allocation6], 4294967168 }
  0xc9   :  { %378 = dma.done.wait [#allocation12], 16  }
  0xca   :  { %379 = vsyncadd [#allocation12], 4294967280 }
  0xcb   :  { %230 = vsyncpa [#allocation5], 1 }
  0xcc   :  { %231 = vsyncpa [#allocation8], 1 }
  0xcd   :  { %232 = vsyncpa [#allocation6], 1 }
  0xce   :  { %233 = vsyncpa [#allocation12], 1 }

</bundles_post_ra>
